<compile_context>
chip_gen: v6e
topology: v6e:2x2x1
jax: 0.10.0
libtpu: 0.0.40
codegen_flags: <defaults>
</compile_context>

<pallas_src>
import jax
import jax.numpy as jnp
from jax.experimental import pallas as pl
from jax.experimental.pallas import tpu as pltpu


# ---------------------------------------------------------------------------
# Primary path: one direct HBM -> HBM DMA (no grid, no VMEM staging).
# ---------------------------------------------------------------------------
def _dma_copy_kernel(x_hbm, o_hbm, sem):
    cp = pltpu.make_async_copy(x_hbm, o_hbm, sem)
    cp.start()
    cp.wait()


def _flatten_dma(x2):
    B, D = x2.shape
    return pl.pallas_call(
        _dma_copy_kernel,
        out_shape=jax.ShapeDtypeStruct((B, D), x2.dtype),
        in_specs=[pl.BlockSpec(memory_space=pl.ANY)],
        out_specs=pl.BlockSpec(memory_space=pl.ANY),
        scratch_shapes=[pltpu.SemaphoreType.DMA(())],
    )(x2)


# ---------------------------------------------------------------------------
# Fallback path: tiled VMEM streaming copy with cdiv tiling.
# ---------------------------------------------------------------------------
def _copy_kernel(x_ref, o_ref):
    # Pure streaming copy of one lane-dense 2-D tile; no in-kernel reshape.
    o_ref[...] = x_ref[...]


_TARGET_TILE_BYTES = 4 * 1024 * 1024   # ~4 MiB per tile
_VMEM_LIMIT_BYTES = 32 * 1024 * 1024   # 2 operands x 2 buffers x 4 MiB << 32 MiB


def _flatten_tiled(x2):
    B, D = x2.shape
    itemsize = jnp.dtype(x2.dtype).itemsize

    # Dtype-aware sublane packing: 8 rows for f32, 16 for bf16, 32 for int8/fp8.
    pack = max(1, 4 // itemsize)
    sub = 8 * pack

    # Row tile: full batch when small (full-extent blocks are always legal),
    # otherwise a multiple of the packed sublane count; cdiv masks the last
    # partial row-block, so tb never has to divide B.
    if B <= sub:
        tb = B
    else:
        tb = (min(B, 4 * sub) // sub) * sub

    # Lane tile: multiple of 128 (or full D when D < 128), sized to ~4 MiB.
    # No "must divide D" requirement — the cdiv grid masks only the final
    # block column, so the tile never degenerates to 4 KiB or blows up to D.
    if D < 128:
        td = D
    else:
        cap = max(128, ((_TARGET_TILE_BYTES // (tb * itemsize)) // 128) * 128)
        td = min((D // 128) * 128, cap)

    grid = (pl.cdiv(B, tb), pl.cdiv(D, td))

    return pl.pallas_call(
        _copy_kernel,
        out_shape=jax.ShapeDtypeStruct((B, D), x2.dtype),
        grid=grid,
        in_specs=[pl.BlockSpec((tb, td), lambda i, j: (i, j))],
        out_specs=pl.BlockSpec((tb, td), lambda i, j: (i, j)),
        compiler_params=pltpu.CompilerParams(
            dimension_semantics=("parallel", "parallel"),
            vmem_limit_bytes=_VMEM_LIMIT_BYTES,
        ),
    )(x2)


def flatten(x):
    """Pallas equivalent of `x.view(x.size(0), -1)` for a contiguous tensor."""
    B = x.shape[0]
    D = 1
    for s in x.shape[1:]:
        D *= s

    # Metadata-only row-major reshape (free in XLA) -> lane-dense 2-D view.
    x2 = x.reshape(B, D)

    try:
        y = _flatten_dma(x2)
        jax.block_until_ready(y)  # surface any lowering/runtime issue here
        return y
    except Exception:
        # Robust tiled streaming-copy fallback.
        return _flatten_tiled(x2)


if __name__ == "__main__":
    # Small CIFAR-style NCHW activation tensor.
    B, C, H, W = 2, 4, 16, 16
    key = jax.random.PRNGKey(0)
    x = jax.random.normal(key, (B, C, H, W), dtype=jnp.float32)

    y = flatten(x)
    y = jax.block_until_ready(y)

    # Reference semantics: torch x.view(B, -1) on a contiguous NCHW tensor
    # == row-major reshape to (B, C*H*W).
    ref = jnp.reshape(x, (B, -1))
    assert y.shape == (B, C * H * W), y.shape
    assert y.dtype == x.dtype
    assert bool(jnp.array_equal(y, ref)), "Pallas flatten mismatch vs reference"

    print("KERNEL_OK")
</pallas_src>

<mosaic_0001>
module attributes {stable_mosaic.version = 11 : i64} {
  func.func @_dma_copy_kernel(%arg0: memref<2x1024xf32, #tpu.memory_space<any>>, %arg1: memref<2x1024xf32, #tpu.memory_space<any>>, %arg2: memref<!tpu.dma_semaphore, #tpu.memory_space<semaphore_mem>>) attributes {dimension_semantics = [], scalar_prefetch = 0 : i64, scratch_operands = 1 : i64, tpu.core_type = #tpu.core_type<tc>} {
    tpu.enqueue_dma source(%arg0 : memref<2x1024xf32, #tpu.memory_space<any>>) target(%arg1 : memref<2x1024xf32, #tpu.memory_space<any>>) target_semaphore(%arg2 : memref<!tpu.dma_semaphore, #tpu.memory_space<semaphore_mem>>)
    tpu.wait_dma2 semaphore(%arg2 : memref<!tpu.dma_semaphore, #tpu.memory_space<semaphore_mem>>) src(%arg0 : memref<2x1024xf32, #tpu.memory_space<any>>) dst(%arg1 : memref<2x1024xf32, #tpu.memory_space<any>>)
    return
  }
}

module attributes {stable_mosaic.version = 11 : i64} {
  func.func @_copy_kernel(%arg0: i32, %arg1: i32, %arg2: memref<2x1024xf32, #tpu.memory_space<vmem>>, %arg3: memref<2x1024xf32, #tpu.memory_space<vmem>>) attributes {dimension_semantics = [#tpu.dimension_semantics<parallel>, #tpu.dimension_semantics<parallel>], iteration_bounds = array<i64: 1, 1>, scalar_prefetch = 0 : i64, scratch_operands = 0 : i64, tpu.core_type = #tpu.core_type<tc>, window_params = [{transform_indices = @transform_0, window_bounds = array<i64: 2, 1024>}, {transform_indices = @transform_1, window_bounds = array<i64: 2, 1024>}]} {
    %c0 = arith.constant 0 : index
    %c0_0 = arith.constant 0 : index
    %0 = vector.load %arg2[%c0, %c0_0] : memref<2x1024xf32, #tpu.memory_space<vmem>>, vector<2x1024xf32>
    %c0_1 = arith.constant 0 : index
    %c0_2 = arith.constant 0 : index
    %1 = vector.load %arg3[%c0_1, %c0_2] : memref<2x1024xf32, #tpu.memory_space<vmem>>, vector<2x1024xf32>
    tpu.vector_store %arg3[%c0_1, %c0_2], %0 {strides = array<i32>} : memref<2x1024xf32, #tpu.memory_space<vmem>>, vector<2x1024xf32>,
    return
  }
  func.func @transform_0(%arg0: i32, %arg1: i32) -> (i32, i32) {
    %c0_i32 = arith.constant 0 : i32
    return %arg0, %arg1 : i32, i32
  }
  func.func @transform_1(%arg0: i32, %arg1: i32) -> (i32, i32) {
    %c0_i32 = arith.constant 0 : i32
    return %arg0, %arg1 : i32, i32
  }
}

</mosaic_0001>

<bundles_post_ra>
// kernel: tpu_custom_call.1
= control target key start
LH: loop header
LB: loop body
LE: loop exit
PB: predicated region body
PF: predicated region fallthrough
CT: control target
= control target key end

     0   :  { %s29_s6 = smov [#allocation2]   ;;  %s30_s7 = smov 131072   ;;  %s48_s0 = inlined_call_operand.hbm [shape: f32[2,1024], index: 0, kind: input, shape index: {}]   ;;  %s49_s1 = inlined_call_operand.hbm [shape: f32[2,1024], index: 1, kind: output, shape index: {}]  }
   0x1   :  { %s31_s8 = smov 0  }
   0x2   :  { %12 = dma.general %s48_s0, 256, %s49_s1, %s29_s6, %s30_s7, [#allocation4], %s31_s8, 0  }
   0x3   :  { %27 = dma.done.wait [#allocation2], 256 }
   0x4   :  { %28 = vsyncadd [#allocation2], 4294967040 }
   0x5   :  { %17 = vsyncmov [#allocation2] }
   0x8   :  { %s18_s13 = vpop.sfrf %17 }
   0x9   :  { %p23_p0 = scmp.ne.s32.totalorder %s18_s13, 0 }
   0xb   :  { %22 = shalt.err (%p23_p0)  }

// kernel: tpu_custom_call.1
= control target key start
LH: loop header
LB: loop body
LE: loop exit
PB: predicated region body
PF: predicated region fallthrough
CT: control target
= control target key end

     0   :  { %6 = vsyncpa [#allocation3], 0  ;;  %s104_s0 = inlined_call_operand.hbm [shape: f32[2,1024], index: 0, kind: input, shape index: {}]   ;;  %s105_s1 = inlined_call_operand.hbm [shape: f32[2,1024], index: 1, kind: output, shape index: {}]  }
   0x1   :  { %7 = vsyncpa [#allocation4], 0  ;;  %s86_s6 = smov [#allocation2]  }
   0x2   :  { %s14_s7 = sshll.u32 %s86_s6, 4  ;;  %s15_s7 = int_to_ptr.vmem [resolvable:$true] %s14_s7 }
   0x3   :  { %s50_s8 = scalar_lea.vmem %s15_s7, 256  ;;  %p55_p1 = scmp.lt.s32.totalorder %s15_s7, %s15_s7 }
   0x4   :  { %p51_p0 = scmp.ne.s32.totalorder %s15_s7, %s50_s8  ;;  %p56_p2 = scmp.lt.s32.totalorder %s50_s8, %s50_s8 }
   0x6   :  { %p57_p3 = por %p56_p2, %p55_p1 }
   0x8   :  { %p58_p4 = pnand %p57_p3, %p51_p0 }
   0xa   :  { %61 = shalt.err (!%p58_p4)
}
   0xb   :  { %17 = dma.hbm_to_vmem [thread:$0]  %s104_s0, 256, %s15_s7, [#allocation3]  }
   0xc   :  { %82 = dma.done.wait [#allocation3], 256  }
   0xd   :  { %83 = vsyncadd [#allocation3], 4294967040  ;;  %s87_s11 = smov [#allocation5]   ;;  %v21_v0 = vld [vmem:[#allocation2] sm:$0xff]  ;;  %v22_v1 = vld [vmem:[#allocation2 + $0x8] sm:$0xff] }
   0xe   :  { %s31_s12 = sshll.u32 %s87_s11, 4  ;;  %23 = vst [vmem:[#allocation5] sm:$0xff] %v21_v0  ;;  %24 = vst [vmem:[#allocation5 + $0x8] sm:$0xff] %v22_v1  ;;  %s32_s12 = int_to_ptr.vmem [resolvable:$true] %s31_s12 }
   0xf   :  { %s62_s13 = scalar_lea.vmem %s32_s12, 256  ;;  %p67_p6 = scmp.lt.s32.totalorder %s32_s12, %s32_s12 }
  0x10   :  { %p63_p5 = scmp.ne.s32.totalorder %s32_s12, %s62_s13  ;;  %p68_p7 = scmp.lt.s32.totalorder %s62_s13, %s62_s13 }
  0x12   :  { %p69_p8 = por %p68_p7, %p67_p6 }
  0x14   :  { %p70_p9 = pnand %p69_p8, %p63_p5 }
  0x16   :  { %73 = shalt.err (!%p70_p9)
}
  0x17   :  { %34 = dma.vmem_to_hbm [thread:$0]  %s32_s12, 256, %s105_s1, [#allocation4]  }
  0x18   :  { %84 = dma.done.wait [#allocation4], 256  }
  0x19   :  { %85 = vsyncadd [#allocation4], 4294967040 }
  0x1a   :  { %38 = vsyncpa [#allocation3], 1 }
  0x1b   :  { %39 = vsyncpa [#allocation4], 1 }

</bundles_post_ra>
